<compile_context>
chip_gen: v5e
topology: v5e:2x2
jax: 0.10.0
libtpu: 0.0.40
codegen_flags: <defaults>
</compile_context>

<pallas_src>
import functools

import jax
import jax.numpy as jnp
from jax import lax
from jax.experimental import pallas as pl
from jax.experimental.pallas import tpu as pltpu


def _round_up(x: int, m: int) -> int:
    return ((x + m - 1) // m) * m


def _lm_head_kernel(h_ref, w_ref, o_ref):
    # h_ref: (tm, D) bf16 hidden tile
    # w_ref: (tn, D) bf16 decoder-weight tile (tied embedding rows)
    # o_ref: (tm, tn) f32 logits tile
    # Contract last dim of both operands: h @ w.T without an explicit transpose.
    o_ref[...] = lax.dot_general(
        h_ref[...],
        w_ref[...],
        dimension_numbers=(((1,), (1,)), ((), ())),
        preferred_element_type=jnp.float32,
    ).astype(o_ref.dtype)


@functools.partial(jax.jit, static_argnames=("tm", "tn"))
def openai_gpt_lm_head(hidden_state, decoder_weight, *, tm=256, tn=512):
    """lm_logits = hidden_state @ decoder_weight.T

    hidden_state:   [B, S, D] float32
    decoder_weight: [V, D]    float32 (already sliced to vocab_size + n_special)
    returns:        [B, S, V] float32
    """
    B, S, D = hidden_state.shape
    V, D_w = decoder_weight.shape
    assert D == D_w, "embedding dims must match"

    M = B * S

    # Shrink tiles for small problems while keeping (8, 128) alignment.
    tm = min(tm, _round_up(M, 8))
    tn = min(tn, _round_up(V, 128))

    M_pad = _round_up(M, tm)
    V_pad = _round_up(V, tn)

    # bf16 inputs (MXU-native, halves weight-stream HBM traffic); f32 accumulate.
    h2d = hidden_state.reshape(M, D).astype(jnp.bfloat16)
    w = decoder_weight.astype(jnp.bfloat16)

    if M_pad != M:
        h2d = jnp.pad(h2d, ((0, M_pad - M), (0, 0)))
    if V_pad != V:
        w = jnp.pad(w, ((0, V_pad - V), (0, 0)))

    n_v = V_pad // tn
    n_m = M_pad // tm
    grid = (n_v, n_m)  # V outer (weight tile resident), M inner (hidden streams)

    flops = 2 * M_pad * V_pad * D
    bytes_accessed = (
        n_v * M_pad * D * 2     # hidden slab re-read once per V tile (bf16)
        + V_pad * D * 2         # weight read once (bf16)
        + M_pad * V_pad * 4     # f32 logits written once
    )

    logits2d = pl.pallas_call(
        _lm_head_kernel,
        out_shape=jax.ShapeDtypeStruct((M_pad, V_pad), jnp.float32),
        grid_spec=pltpu.PrefetchScalarGridSpec(
            num_scalar_prefetch=0,
            grid=grid,
            in_specs=[
                pl.BlockSpec((tm, D), lambda j, i: (i, 0)),  # hidden tile (inner axis)
                pl.BlockSpec((tn, D), lambda j, i: (j, 0)),  # weight tile (outer axis)
            ],
            out_specs=pl.BlockSpec((tm, tn), lambda j, i: (i, j)),
        ),
        compiler_params=pltpu.CompilerParams(
            dimension_semantics=("parallel", "parallel"),
            vmem_limit_bytes=32 * 1024 * 1024,  # safe on v5e/v6e/v7x; tiles ≪ this
        ),
        cost_estimate=pl.CostEstimate(
            flops=flops, transcendentals=0, bytes_accessed=bytes_accessed
        ),
    )(h2d, w)

    return logits2d[:M, :V].reshape(B, S, V)


if __name__ == "__main__":
    # Small, module-consistent config.
    batch, seq = 2, 8
    n_embd = 32
    vocab_size = 40
    n_special = 8
    n_positions = 16  # extra rows in the full embedding table (positions etc.)

    total_embed_rows = vocab_size + n_special + n_positions
    V = vocab_size + n_special  # rows actually used by the LM head

    key = jax.random.PRNGKey(0)
    k_emb, k_hid = jax.random.split(key)

    # model_embeddings_weights (tied token embedding matrix), then slice
    # exactly like set_embeddings_weights does.
    model_embeddings_weights = (
        0.02 * jax.random.normal(k_emb, (total_embed_rows, n_embd), dtype=jnp.float32)
    )
    decoder_weight = model_embeddings_weights[:V]  # [V, n_embd]

    hidden_state = jax.random.normal(k_hid, (batch, seq, n_embd), dtype=jnp.float32)

    lm_logits = openai_gpt_lm_head(hidden_state, decoder_weight)
    lm_logits = jax.block_until_ready(lm_logits)

    # Reference check against plain JAX (same bf16 input quantization, f32 acc).
    h_bf = hidden_state.astype(jnp.bfloat16).astype(jnp.float32)
    w_bf = decoder_weight.astype(jnp.bfloat16).astype(jnp.float32)
    ref = jnp.einsum("bsd,vd->bsv", h_bf, w_bf)

    assert lm_logits.shape == (batch, seq, V)
    assert jnp.allclose(lm_logits, ref, atol=1e-3, rtol=1e-3)
    # Sanity vs full-precision reference (loose, bf16 input quantization).
    ref_f32 = jnp.einsum("bsd,vd->bsv", hidden_state, decoder_weight)
    assert jnp.allclose(lm_logits, ref_f32, atol=2e-2, rtol=2e-2)

    print("KERNEL_OK")
</pallas_src>

<mosaic_0001>
module attributes {stable_mosaic.version = 11 : i64} {
  func.func @_lm_head_kernel(%arg0: i32, %arg1: i32, %arg2: memref<16x32xbf16, #tpu.memory_space<vmem>>, %arg3: memref<128x32xbf16, #tpu.memory_space<vmem>>, %arg4: memref<16x128xf32, #tpu.memory_space<vmem>>) attributes {dimension_semantics = [#tpu.dimension_semantics<parallel>, #tpu.dimension_semantics<parallel>], iteration_bounds = array<i64: 1, 1>, scalar_prefetch = 0 : i64, scratch_operands = 0 : i64, tpu.core_type = #tpu.core_type<tc>, window_params = [{transform_indices = @transform_0, window_bounds = array<i64: 16, 32>}, {transform_indices = @transform_1, window_bounds = array<i64: 128, 32>}, {transform_indices = @transform_2, window_bounds = array<i64: 16, 128>}]} {
    %c0 = arith.constant 0 : index
    %c0_0 = arith.constant 0 : index
    %0 = vector.load %arg2[%c0, %c0_0] : memref<16x32xbf16, #tpu.memory_space<vmem>>, vector<16x32xbf16>
    %c0_1 = arith.constant 0 : index
    %c0_2 = arith.constant 0 : index
    %1 = vector.load %arg3[%c0_1, %c0_2] : memref<128x32xbf16, #tpu.memory_space<vmem>>, vector<128x32xbf16>
    %cst = arith.constant dense<0.000000e+00> : vector<16x128xf32>
    %2 = tpu.matmul %0, %1, %cst {dimension_numbers = #tpu.dot_dimension_numbers<[1], [1], [0], [0], [0, 0, 1, 0], [], []>} : vector<16x32xbf16>, vector<128x32xbf16>, vector<16x128xf32> -> vector<16x128xf32>
    %c0_3 = arith.constant 0 : index
    %c0_4 = arith.constant 0 : index
    %3 = vector.load %arg4[%c0_3, %c0_4] : memref<16x128xf32, #tpu.memory_space<vmem>>, vector<16x128xf32>
    tpu.vector_store %arg4[%c0_3, %c0_4], %2 {strides = array<i32>} : memref<16x128xf32, #tpu.memory_space<vmem>>, vector<16x128xf32>,
    return
  }
  func.func @transform_0(%arg0: i32, %arg1: i32) -> (i32, i32) {
    %c0_i32 = arith.constant 0 : i32
    %c0_i32_0 = arith.constant 0 : i32
    return %arg1, %c0_i32 : i32, i32
  }
  func.func @transform_1(%arg0: i32, %arg1: i32) -> (i32, i32) {
    %c0_i32 = arith.constant 0 : i32
    %c0_i32_0 = arith.constant 0 : i32
    return %arg0, %c0_i32 : i32, i32
  }
  func.func @transform_2(%arg0: i32, %arg1: i32) -> (i32, i32) {
    %c0_i32 = arith.constant 0 : i32
    return %arg1, %arg0 : i32, i32
  }
}

</mosaic_0001>

<bundles_post_ra>
// kernel: openai_gpt_lm_head.1
= control target key start
LH: loop header
LB: loop body
LE: loop exit
PB: predicated region body
PF: predicated region fallthrough
CT: control target
= control target key end

     0   :  { %vm74_vm0 = vcmask 261120   ;;  %s225_s1 = inlined_call_operand.vmem [shape: bf16[128,32], index: 1, kind: input, shape index: {}]   ;;  %s226_s0 = inlined_call_operand.vmem [shape: bf16[16,32], index: 0, kind: input, shape index: {}]   ;;  %s227_s2 = inlined_call_operand.vmem [shape: f32[16,128], index: 2, kind: output, shape index: {}]  }
   0x1   :  { %v167_v0 = vld [vmem:[%s225_s1 + $0x38] sm:$0xff]  ;;  %v166_v2 = vld [vmem:[%s225_s1 + $0x30] sm:$0xff]  ;;  %v165_v4 = vld [vmem:[%s225_s1 + $0x28] sm:$0xff] }
   0x2   :  { %v100_v1 = vsel %vm74_vm0, %v167_v0, 0  ;;  %v97_v3 = vsel %vm74_vm0, %v166_v2, 0  ;;  %v94_v5 = vsel %vm74_vm0, %v165_v4, 0  ;;  %v164_v6 = vld [vmem:[%s225_s1 + $0x20] sm:$0xff]  ;;  %v163_v8 = vld [vmem:[%s225_s1 + $0x18] sm:$0xff]  ;;  %v162_v10 = vld [vmem:[%s225_s1 + $0x10] sm:$0xff] }
   0x3   :  { %102 = vmatpush.bf16.xpose.msra.mxu0 %v100_v1  ;;  %v91_v7 = vsel %vm74_vm0, %v164_v6, 0  ;;  %v88_v9 = vsel %vm74_vm0, %v163_v8, 0  ;;  %v85_v11 = vsel %vm74_vm0, %v162_v10, 0  ;;  %v161_v12 = vld [vmem:[%s225_s1 + $0x8] sm:$0xff]  ;;  %v160_v14 = vld [vmem:[%s225_s1] sm:$0xff] }
   0x4   :  { %v82_v13 = vsel %vm74_vm0, %v161_v12, 0  ;;  %v79_v15 = vsel %vm74_vm0, %v160_v14, 0  ;;  %v159_v16 = vld [vmem:[%s226_s0] sm:$0xff] }
   0xb   :  { %103 = vmatpush.bf16.xpose.msra.mxu0 %v97_v3 }
  0x13   :  { %104 = vmatpush.bf16.xpose.msra.mxu0 %v94_v5 }
  0x1b   :  { %105 = vmatpush.bf16.xpose.msra.mxu0 %v91_v7 }
  0x23   :  { %106 = vmatpush.bf16.xpose.msra.mxu0 %v88_v9 }
  0x2b   :  { %107 = vmatpush.bf16.xpose.msra.mxu0 %v85_v11 }
  0x33   :  { %108 = vmatpush.bf16.xpose.msra.mxu0 %v82_v13 }
  0x3b   :  { %109 = vmatpush.bf16.xpose.msra.mxu0 %v79_v15 }
  0x42   :  { %158 = vmatmul.msk.bf16.vlgmr.msra.gmra.mxu0 %vm74_vm0, %v159_v16 }
  0xbf   :  { %v111_v17 = vpop.f32.mrf.mxu0 }
  0xc0   :  { %116 = vst [vmem:[%s227_s2] sm:$0xff] %v111_v17 }
  0xc7   :  { %v113_v18 = vpop.f32.mrf.mxu0 }
  0xc8   :  { %117 = vst [vmem:[%s227_s2 + $0x8] sm:$0xff] %v113_v18 }

</bundles_post_ra>
